<compile_context>
chip_gen: v6e
topology: v6e:2x2x1
jax: 0.10.0
libtpu: 0.0.40
codegen_flags: <defaults>
</compile_context>

<pallas_src>
import functools

import jax
import jax.numpy as jnp
from jax.experimental import pallas as pl
from jax.experimental.pallas import tpu as pltpu

_TB_MAX = 2048     # max batch-tile rows per grid step
_HID = 128
_IN = 64
_OUT = 4


def _round_up(n, m):
    return ((n + m - 1) // m) * m


def _mlp_kernel(x_ref, w1_ref, b1_ref, w2_ref, b2_ref, w3_ref, b3_ref, o_ref):
    # Layer 1: Linear(64->128) + ReLU.  x cast to bf16 in-kernel (no wrapper
    # pad/cast pass); K=64 is fine on every MXU generation.
    x = x_ref[...].astype(jnp.bfloat16)
    h1 = jnp.dot(x, w1_ref[...], preferred_element_type=jnp.float32)
    h1 = jnp.maximum(h1 + b1_ref[...], 0.0)

    # Layer 2: Linear(128->128) + Sigmoid.  tanh form -> half the EUP ops of
    # exp + reciprocal; kept in f32 so it lowers cleanly on v5e as well.
    z2 = jnp.dot(h1.astype(jnp.bfloat16), w2_ref[...],
                 preferred_element_type=jnp.float32)
    z2 = z2 + b2_ref[...]
    h2 = 0.5 * jnp.tanh(0.5 * z2) + 0.5

    # Layer 3: Linear(128->4).  Narrow (4-lane) output block; store is masked
    # but the per-step vreg-store count is the same and HBM writeback is ~32x
    # smaller than a 128-lane f32 pad.
    out = jnp.dot(h2.astype(jnp.bfloat16), w3_ref[...],
                  preferred_element_type=jnp.float32)
    o_ref[...] = (out + b3_ref[...]).astype(o_ref.dtype)


def _choose_tb(b_pad):
    if b_pad >= 2 * _TB_MAX:
        return _TB_MAX                                # many steps anyway
    if b_pad >= 1024:
        # >= 2 grid steps so the "parallel" axis shards over v7x's 2 TCs.
        return _round_up(pl.cdiv(b_pad, 2), 8)
    return b_pad                                      # tiny batch: 1 step


@functools.partial(jax.jit, static_argnames=())
def _forward_impl(x_pad, w1, b1, w2, b2, w3, b3):
    b_pad = x_pad.shape[0]
    tb = _choose_tb(b_pad)
    grid = (pl.cdiv(b_pad, tb),)

    x_spec = pl.BlockSpec((tb, _IN), lambda i: (i, 0))
    o_spec = pl.BlockSpec((tb, _OUT), lambda i: (i, 0))
    # Constant index_map -> weights/biases stay resident in VMEM; Pallas skips
    # re-DMA when the block index does not change across grid steps.
    w_spec = lambda r, c: pl.BlockSpec((r, c), lambda i: (0, 0))

    flops = 2 * b_pad * (_IN * _HID + _HID * _HID + _HID * _OUT)
    bytes_accessed = (
        x_pad.size * 4                                # x (f32)
        + (w1.size + w2.size + w3.size) * 2           # weights (bf16)
        + (b1.size + b2.size + b3.size) * 4           # biases (f32)
        + b_pad * _OUT * 4                            # output (f32)
    )

    return pl.pallas_call(
        _mlp_kernel,
        out_shape=jax.ShapeDtypeStruct((b_pad, _OUT), jnp.float32),
        grid=grid,
        in_specs=[
            x_spec,
            w_spec(_IN, _HID), w_spec(1, _HID),
            w_spec(_HID, _HID), w_spec(1, _HID),
            w_spec(_HID, _OUT), w_spec(1, _OUT),
        ],
        out_specs=o_spec,
        compiler_params=pltpu.CompilerParams(
            dimension_semantics=("parallel",)),
        cost_estimate=pl.CostEstimate(
            flops=flops,
            transcendentals=b_pad * _HID,
            bytes_accessed=bytes_accessed),
    )(x_pad, w1, b1, w2, b2, w3, b3)


def gc_model_forward(x, prepared):
    """x: [B, 64] float32; prepared: output of prepare_params(). Returns [B, 4]."""
    B = x.shape[0]
    b_pad = _round_up(B, 8)
    if b_pad != B:
        x = jnp.pad(x, ((0, b_pad - B), (0, 0)))      # only up to 7 pad rows
    out = _forward_impl(
        x,
        prepared["w1"], prepared["b1"],
        prepared["w2"], prepared["b2"],
        prepared["w3"], prepared["b3"],
    )
    return out[:B] if b_pad != B else out


# ----------------------------- parameters ---------------------------------

def _linear_init(key, fan_in, fan_out):
    """PyTorch nn.Linear default init: U(-1/sqrt(fan_in), 1/sqrt(fan_in)).
    Returns W of shape [fan_in, fan_out] (already transposed for x @ W)."""
    kw, kb = jax.random.split(key)
    bound = 1.0 / (fan_in ** 0.5)
    w = jax.random.uniform(kw, (fan_in, fan_out), jnp.float32, -bound, bound)
    b = jax.random.uniform(kb, (1, fan_out), jnp.float32, -bound, bound)
    return w, b


def init_params(key):
    k1, k2, k3 = jax.random.split(key, 3)
    w1, b1 = _linear_init(k1, _IN, _HID)
    w2, b2 = _linear_init(k2, _HID, _HID)
    w3, b3 = _linear_init(k3, _HID, _OUT)
    return {"w1": w1, "b1": b1, "w2": w2, "b2": b2, "w3": w3, "b3": b3}


def prepare_params(params):
    """One-time kernel-ready prep (hoisted out of the forward): bf16 matmul
    operands, f32 biases.  No shape padding needed anymore."""
    return {
        "w1": params["w1"].astype(jnp.bfloat16),
        "b1": params["b1"].astype(jnp.float32),
        "w2": params["w2"].astype(jnp.bfloat16),
        "b2": params["b2"].astype(jnp.float32),
        "w3": params["w3"].astype(jnp.bfloat16),
        "b3": params["b3"].astype(jnp.float32),
    }


def _reference_forward(x, p):
    h1 = jnp.maximum(x @ p["w1"] + p["b1"], 0.0)
    h2 = jax.nn.sigmoid(h1 @ p["w2"] + p["b2"])
    return h2 @ p["w3"] + p["b3"]


if __name__ == "__main__":
    key = jax.random.PRNGKey(0)
    kx, kp = jax.random.split(key)
    params = init_params(kp)
    prepared = prepare_params(params)   # done once, not per forward call

    def check(B):
        x = jax.random.normal(jax.random.fold_in(kx, B), (B, _IN), jnp.float32)
        out = jax.block_until_ready(gc_model_forward(x, prepared))
        ref = _reference_forward(x, params)
        assert out.shape == (B, _OUT), out.shape
        # bf16 MXU operands -> looser tolerance than the pure-f32 reference.
        assert jnp.allclose(out, ref, atol=2e-2, rtol=2e-2), \
            float(jnp.max(jnp.abs(out - ref)))

    check(8)       # small batch, single grid step
    check(37)      # batch not divisible by 8 -> wrapper tail padding
    check(1032)    # multi-step grid, ragged last block (masked store path)

    print("KERNEL_OK")
</pallas_src>

<mosaic_0001>
module attributes {stable_mosaic.version = 11 : i64} {
  func.func @_mlp_kernel(%arg0: i32, %arg1: memref<8x64xf32, #tpu.memory_space<vmem>>, %arg2: memref<64x128xbf16, #tpu.memory_space<vmem>>, %arg3: memref<1x128xf32, #tpu.memory_space<vmem>>, %arg4: memref<128x128xbf16, #tpu.memory_space<vmem>>, %arg5: memref<1x128xf32, #tpu.memory_space<vmem>>, %arg6: memref<128x4xbf16, #tpu.memory_space<vmem>>, %arg7: memref<1x4xf32, #tpu.memory_space<vmem>>, %arg8: memref<8x4xf32, #tpu.memory_space<vmem>>) attributes {dimension_semantics = [#tpu.dimension_semantics<parallel>], iteration_bounds = array<i64: 1>, scalar_prefetch = 0 : i64, scratch_operands = 0 : i64, tpu.core_type = #tpu.core_type<tc>, window_params = [{transform_indices = @transform_0, window_bounds = array<i64: 8, 64>}, {pipeline_mode = #tpu.pipeline_mode<synchronous>, transform_indices = @transform_1, window_bounds = array<i64: 64, 128>}, {pipeline_mode = #tpu.pipeline_mode<synchronous>, transform_indices = @transform_2, window_bounds = array<i64: 1, 128>}, {pipeline_mode = #tpu.pipeline_mode<synchronous>, transform_indices = @transform_3, window_bounds = array<i64: 128, 128>}, {pipeline_mode = #tpu.pipeline_mode<synchronous>, transform_indices = @transform_4, window_bounds = array<i64: 1, 128>}, {pipeline_mode = #tpu.pipeline_mode<synchronous>, transform_indices = @transform_5, window_bounds = array<i64: 128, 4>}, {pipeline_mode = #tpu.pipeline_mode<synchronous>, transform_indices = @transform_6, window_bounds = array<i64: 1, 4>}, {transform_indices = @transform_7, window_bounds = array<i64: 8, 4>}]} {
    %c0 = arith.constant 0 : index
    %c0_0 = arith.constant 0 : index
    %0 = vector.load %arg1[%c0, %c0_0] : memref<8x64xf32, #tpu.memory_space<vmem>>, vector<8x64xf32>
    %1 = arith.truncf %0 : vector<8x64xf32> to vector<8x64xbf16>
    %c0_1 = arith.constant 0 : index
    %c0_2 = arith.constant 0 : index
    %2 = vector.load %arg2[%c0_1, %c0_2] : memref<64x128xbf16, #tpu.memory_space<vmem>>, vector<64x128xbf16>
    %cst = arith.constant dense<0.000000e+00> : vector<8x128xf32>
    %3 = tpu.matmul %1, %2, %cst {dimension_numbers = #tpu.dot_dimension_numbers<[1], [0], [0], [1], [0, 0, 1, 1], [], []>} : vector<8x64xbf16>, vector<64x128xbf16>, vector<8x128xf32> -> vector<8x128xf32>
    %c0_3 = arith.constant 0 : index
    %c0_4 = arith.constant 0 : index
    %4 = vector.load %arg3[%c0_3, %c0_4] : memref<1x128xf32, #tpu.memory_space<vmem>>, vector<1x128xf32>
    %5 = vector.broadcast %4 : vector<1x128xf32> to vector<8x128xf32>
    %6 = arith.addf %3, %5 : vector<8x128xf32>
    %cst_5 = arith.constant 0.000000e+00 : f32
    %7 = vector.broadcast %cst_5 : f32 to vector<8x128xf32>
    %8 = arith.maximumf %6, %7 : vector<8x128xf32>
    %9 = arith.truncf %8 : vector<8x128xf32> to vector<8x128xbf16>
    %c0_6 = arith.constant 0 : index
    %c0_7 = arith.constant 0 : index
    %10 = vector.load %arg4[%c0_6, %c0_7] : memref<128x128xbf16, #tpu.memory_space<vmem>>, vector<128x128xbf16>
    %cst_8 = arith.constant dense<0.000000e+00> : vector<8x128xf32>
    %11 = tpu.matmul %9, %10, %cst_8 {dimension_numbers = #tpu.dot_dimension_numbers<[1], [0], [0], [1], [0, 0, 1, 1], [], []>} : vector<8x128xbf16>, vector<128x128xbf16>, vector<8x128xf32> -> vector<8x128xf32>
    %c0_9 = arith.constant 0 : index
    %c0_10 = arith.constant 0 : index
    %12 = vector.load %arg5[%c0_9, %c0_10] : memref<1x128xf32, #tpu.memory_space<vmem>>, vector<1x128xf32>
    %13 = vector.broadcast %12 : vector<1x128xf32> to vector<8x128xf32>
    %14 = arith.addf %11, %13 : vector<8x128xf32>
    %cst_11 = arith.constant 5.000000e-01 : f32
    %15 = vector.broadcast %cst_11 : f32 to vector<8x128xf32>
    %16 = arith.mulf %15, %14 : vector<8x128xf32>
    %17 = math.tanh %16 : vector<8x128xf32>
    %cst_12 = arith.constant 5.000000e-01 : f32
    %18 = vector.broadcast %cst_12 : f32 to vector<8x128xf32>
    %19 = arith.mulf %18, %17 : vector<8x128xf32>
    %cst_13 = arith.constant 5.000000e-01 : f32
    %20 = vector.broadcast %cst_13 : f32 to vector<8x128xf32>
    %21 = arith.addf %19, %20 : vector<8x128xf32>
    %22 = arith.truncf %21 : vector<8x128xf32> to vector<8x128xbf16>
    %c0_14 = arith.constant 0 : index
    %c0_15 = arith.constant 0 : index
    %23 = vector.load %arg6[%c0_14, %c0_15] : memref<128x4xbf16, #tpu.memory_space<vmem>>, vector<128x4xbf16>
    %cst_16 = arith.constant dense<0.000000e+00> : vector<8x4xf32>
    %24 = tpu.matmul %22, %23, %cst_16 {dimension_numbers = #tpu.dot_dimension_numbers<[1], [0], [0], [1], [0, 0, 1, 1], [], []>} : vector<8x128xbf16>, vector<128x4xbf16>, vector<8x4xf32> -> vector<8x4xf32>
    %c0_17 = arith.constant 0 : index
    %c0_18 = arith.constant 0 : index
    %25 = vector.load %arg7[%c0_17, %c0_18] : memref<1x4xf32, #tpu.memory_space<vmem>>, vector<1x4xf32>
    %26 = vector.broadcast %25 : vector<1x4xf32> to vector<8x4xf32>
    %27 = arith.addf %24, %26 : vector<8x4xf32>
    %c0_19 = arith.constant 0 : index
    %c0_20 = arith.constant 0 : index
    %28 = vector.load %arg8[%c0_19, %c0_20] : memref<8x4xf32, #tpu.memory_space<vmem>>, vector<8x4xf32>
    tpu.vector_store %arg8[%c0_19, %c0_20], %27 {strides = array<i32>} : memref<8x4xf32, #tpu.memory_space<vmem>>, vector<8x4xf32>,
    return
  }
  func.func @transform_0(%arg0: i32) -> (i32, i32) {
    %c0_i32 = arith.constant 0 : i32
    %c0_i32_0 = arith.constant 0 : i32
    return %arg0, %c0_i32 : i32, i32
  }
  func.func @transform_1(%arg0: i32) -> (i32, i32) {
    %c0_i32 = arith.constant 0 : i32
    %c0_i32_0 = arith.constant 0 : i32
    %c0_i32_1 = arith.constant 0 : i32
    return %c0_i32, %c0_i32_0 : i32, i32
  }
  func.func @transform_2(%arg0: i32) -> (i32, i32) {
    %c0_i32 = arith.constant 0 : i32
    %c0_i32_0 = arith.constant 0 : i32
    %c0_i32_1 = arith.constant 0 : i32
    return %c0_i32, %c0_i32_0 : i32, i32
  }
  func.func @transform_3(%arg0: i32) -> (i32, i32) {
    %c0_i32 = arith.constant 0 : i32
    %c0_i32_0 = arith.constant 0 : i32
    %c0_i32_1 = arith.constant 0 : i32
    return %c0_i32, %c0_i32_0 : i32, i32
  }
  func.func @transform_4(%arg0: i32) -> (i32, i32) {
    %c0_i32 = arith.constant 0 : i32
    %c0_i32_0 = arith.constant 0 : i32
    %c0_i32_1 = arith.constant 0 : i32
    return %c0_i32, %c0_i32_0 : i32, i32
  }
  func.func @transform_5(%arg0: i32) -> (i32, i32) {
    %c0_i32 = arith.constant 0 : i32
    %c0_i32_0 = arith.constant 0 : i32
    %c0_i32_1 = arith.constant 0 : i32
    return %c0_i32, %c0_i32_0 : i32, i32
  }
  func.func @transform_6(%arg0: i32) -> (i32, i32) {
    %c0_i32 = arith.constant 0 : i32
    %c0_i32_0 = arith.constant 0 : i32
    %c0_i32_1 = arith.constant 0 : i32
    return %c0_i32, %c0_i32_0 : i32, i32
  }
  func.func @transform_7(%arg0: i32) -> (i32, i32) {
    %c0_i32 = arith.constant 0 : i32
    %c0_i32_0 = arith.constant 0 : i32
    return %arg0, %c0_i32 : i32, i32
  }
}

</mosaic_0001>

<bundles_post_ra>
// kernel: _forward_impl.1
= control target key start
LH: loop header
LB: loop body
LE: loop exit
PB: predicated region body
PF: predicated region fallthrough
CT: control target
= control target key end

     0   :  { %12 = vsyncpa [#allocation3], 0  ;;  %s684_s0 = inlined_call_operand.hbm [shape: f32[8,64], index: 0, kind: input, shape index: {}]   ;;  %s685_s1 = inlined_call_operand.hbm [shape: bf16[64,128], index: 1, kind: input, shape index: {}]   ;;  %s686_s2 = inlined_call_operand.vmem [shape: f32[1,128], index: 2, kind: input, shape index: {}]   ;;  %s687_s3 = inlined_call_operand.vmem [shape: bf16[128,128], index: 3, kind: input, shape index: {}]   ;;  %s688_s4 = inlined_call_operand.vmem [shape: f32[1,128], index: 4, kind: input, shape index: {}]   ;;  %s689_s5 = inlined_call_operand.vmem [shape: bf16[128,4], index: 5, kind: input, shape index: {}]   ;;  %s690_s6 = inlined_call_operand.vmem [shape: f32[1,4], index: 6, kind: input, shape index: {}]   ;;  %s691_s7 = inlined_call_operand.vmem [shape: f32[8,4], index: 7, kind: output, shape index: {}]  }
   0x1   :  { %13 = vsyncpa [#allocation5], 0  ;;  %s546_s24 = smov [#allocation2]   ;;  %s547_s26 = smov [#allocation4]  }
   0x2   :  { %s20_s25 = sshll.u32 %s546_s24, 4  ;;  %s29_s27 = sshll.u32 %s547_s26, 4  ;;  %s21_s25 = int_to_ptr.vmem [resolvable:$true] %s20_s25  ;;  %s30_s27 = int_to_ptr.vmem [resolvable:$true] %s29_s27 }
   0x3   :  { %s510_s28 = scalar_lea.vmem %s21_s25, 128  ;;  %p515_p1 = scmp.lt.s32.totalorder %s21_s25, %s21_s25 }
   0x4   :  { %p511_p0 = scmp.ne.s32.totalorder %s21_s25, %s510_s28  ;;  %p516_p2 = scmp.lt.s32.totalorder %s510_s28, %s510_s28 }
   0x6   :  { %p517_p3 = por %p516_p2, %p515_p1 }
   0x8   :  { %p518_p4 = pnand %p517_p3, %p511_p0 }
   0xa   :  { %521 = shalt.err (!%p518_p4)
}
   0xb   :  { %23 = dma.hbm_to_vmem [thread:$0]  %s684_s0, 128, %s21_s25, [#allocation3]  }
   0xc   :  { %s530_s8 = scalar_lea.vmem %s30_s27, 512  ;;  %p535_p6 = scmp.lt.s32.totalorder %s30_s27, %s30_s27 }
   0xd   :  { %p531_p5 = scmp.ne.s32.totalorder %s30_s27, %s530_s8  ;;  %p536_p7 = scmp.lt.s32.totalorder %s530_s8, %s530_s8 }
   0xf   :  { %p537_p8 = por %p536_p7, %p535_p6 }
  0x11   :  { %p538_p9 = pnand %p537_p8, %p531_p5 }
  0x13   :  { %541 = shalt.err (!%p538_p9)
}
  0x14   :  { %s548_s9 = smov 64   ;;  %s549_s10 = smov 4  }
  0x15   :  { %35 = dma.hbm_to_vmem [thread:$0]  %s685_s1, 512, %s30_s27, [#allocation5], %s548_s9, %s548_s9, %s549_s10  }
  0x16   :  { %542 = dma.done.wait [#allocation3], 128  }
  0x17   :  { %543 = vsyncadd [#allocation3], 4294967168 }
  0x18   :  { %544 = dma.done.wait [#allocation5], 512  }
  0x19   :  { %545 = vsyncadd [#allocation5], 4294966784  ;;  %v550_v0 = vmov 0.0   ;;  %vm551_vm0 = vmmov 0   ;;  %v480_v1 = vld [vmem:[#allocation4 + $0x18] sm:$0xff]   ;;  %v481_v2 = vld [vmem:[#allocation4 + $0x10] sm:$0xff]  }
  0x1a   :  { %422 = vmatprep.subr.bf16.mxu0 %v550_v0  ;;  %430 = vmatprep.mubr.msk.bf16.mxu0 %vm551_vm0, %v550_v0  ;;  %v484_v3 = vld [vmem:[%s687_s3 + $0x38] sm:$0xff]   ;;  %v482_v4 = vld [vmem:[#allocation4 + $0x8] sm:$0xff]   ;;  %v483_v6 = vld [vmem:[#allocation4] sm:$0xff]   ;;  %vm94_vm1 = vcmask 523264   ;;  %vm367_vm2 = vcmask 31744  }
  0x1b   :  { %434 = vmatprep.subr.bf16.mxu1 %v550_v0  ;;  %450 = vmatprep.mubr.msk.bf16.mxu1 %vm551_vm0, %v550_v0  ;;  %v485_v5 = vld [vmem:[%s687_s3 + $0x30] sm:$0xff]   ;;  %v53_v7 = vld [vmem:[#allocation2] sm:$0xff]  ;;  %v486_v8 = vld [vmem:[%s687_s3 + $0x28] sm:$0xff]  }
  0x1c   :  { %423 = vmatpush3.bf16.msra.mxu0 %v480_v1  ;;  %435 = vmatpush3.bf16.msra.mxu1 %v484_v3  ;;  %v54_v9 = vpack.c.bf16 %v53_v7, %v53_v7  ;;  %v487_v10 = vld [vmem:[%s687_s3 + $0x20] sm:$0xff]   ;;  %v488_v11 = vld [vmem:[%s687_s3 + $0x18] sm:$0xff]   ;;  %v489_v12 = vld [vmem:[%s687_s3 + $0x10] sm:$0xff]  }
  0x1d   :  { %424 = vmatprep.subr.bf16.mxu0 %v550_v0  ;;  %436 = vmatprep.subr.bf16.mxu1 %v550_v0  ;;  %v490_v13 = vld [vmem:[%s687_s3 + $0x8] sm:$0xff]   ;;  %v491_v14 = vld [vmem:[%s687_s3] sm:$0xff]   ;;  %v492_v15 = vld [vmem:[%s689_s5 + $0x38] sm:$0xff]  }
  0x1e   :  { %v493_v16 = vld [vmem:[%s689_s5 + $0x30] sm:$0xff]   ;;  %v375_v17 = vld [vmem:[%s686_s2] ss:$0 sm:$0xff]  ;;  %v494_v25 = vld [vmem:[%s689_s5 + $0x28] sm:$0xff]  }
  0x1f   :  { %v495_v26 = vld [vmem:[%s689_s5 + $0x20] sm:$0xff]   ;;  %v496_v27 = vld [vmem:[%s689_s5 + $0x18] sm:$0xff]   ;;  %v497_v28 = vld [vmem:[%s689_s5 + $0x10] sm:$0xff]  }
  0x20   :  { %425 = vmatpush3.bf16.msra.mxu0 %v481_v2  ;;  %437 = vmatpush3.bf16.msra.mxu1 %v485_v5  ;;  %v498_v29 = vld [vmem:[%s689_s5 + $0x8] sm:$0xff]   ;;  %v499_v30 = vld [vmem:[%s689_s5] sm:$0xff]  }
  0x21   :  { %426 = vmatprep.subr.bf16.mxu0 %v550_v0  ;;  %438 = vmatprep.subr.bf16.mxu1 %v550_v0  ;;  %v381_v31 = vld [vmem:[%s688_s4] ss:$0 sm:$0xff] }
  0x22   :  { %v390_v42 = vld [vmem:[%s690_s6] ss:$0 sm:$0xff] }
  0x24   :  { %427 = vmatpush3.bf16.msra.mxu0 %v482_v4  ;;  %439 = vmatpush3.bf16.msra.mxu1 %v486_v8 }
  0x25   :  { %428 = vmatprep.subr.bf16.mxu0 %v550_v0  ;;  %440 = vmatprep.subr.bf16.mxu1 %v550_v0 }
  0x28   :  { %429 = vmatpush3.bf16.msra.mxu0 %v483_v6  ;;  %441 = vmatpush3.bf16.msra.mxu1 %v487_v10 }
  0x29   :  { %454 = vmatprep.subr.bf16.mxu0 %v550_v0  ;;  %442 = vmatprep.subr.bf16.mxu1 %v550_v0 }
  0x2b   :  { %431 = vmatmul.mubr.msk.bf16.vlgmr.msra.gmra.mxu0 %vm94_vm1, %v54_v9 }
  0x2c   :  { %470 = vmatprep.mubr.msk.bf16.mxu0 %vm551_vm0, %v550_v0  ;;  %443 = vmatpush3.bf16.msra.mxu1 %v488_v11 }
  0x2d   :  { %444 = vmatprep.subr.bf16.mxu1 %v550_v0  ;;  %455 = vmatpush3.bf16.msra.mxu0 %v492_v15 }
  0x2e   :  { %456 = vmatprep.subr.bf16.mxu0 %v550_v0 }
  0x30   :  { %445 = vmatpush3.bf16.msra.mxu1 %v489_v12 }
  0x31   :  { %446 = vmatprep.subr.bf16.mxu1 %v550_v0  ;;  %457 = vmatpush3.bf16.msra.mxu0 %v493_v16 }
  0x32   :  { %458 = vmatprep.subr.bf16.mxu0 %v550_v0 }
  0x34   :  { %447 = vmatpush3.bf16.msra.mxu1 %v490_v13 }
  0x35   :  { %448 = vmatprep.subr.bf16.mxu1 %v550_v0  ;;  %459 = vmatpush3.bf16.msra.mxu0 %v494_v25 }
  0x36   :  { %460 = vmatprep.subr.bf16.mxu0 %v550_v0 }
  0x38   :  { %449 = vmatpush3.bf16.msra.mxu1 %v491_v14 }
  0x39   :  { %461 = vmatpush3.bf16.msra.mxu0 %v495_v26 }
  0x3a   :  { %462 = vmatprep.subr.bf16.mxu0 %v550_v0 }
  0x3d   :  { %463 = vmatpush3.bf16.msra.mxu0 %v496_v27 }
  0x3e   :  { %464 = vmatprep.subr.bf16.mxu0 %v550_v0 }
  0x41   :  { %465 = vmatpush3.bf16.msra.mxu0 %v497_v28 }
  0x42   :  { %466 = vmatprep.subr.bf16.mxu0 %v550_v0 }
  0x45   :  { %467 = vmatpush3.bf16.msra.mxu0 %v498_v29 }
  0x46   :  { %468 = vmatprep.subr.bf16.mxu0 %v550_v0 }
  0x49   :  { %469 = vmatpush3.bf16.msra.mxu0 %v499_v30 }
  0xeb   :  { %v132_v18 = vpop.f32.mrf.mxu0 }
  0xec   :  { %v133_v19 = vadd.f32 %v375_v17, %v132_v18 }
  0xed   :  { %v432_v20 = vpop.f32.mrf.mxu0 }
  0xee   :  { %v138_v21 = vmax.f32 %v133_v19, 0.0 }
  0xef   :  { %v135_v22 = vpop.f32.mrf.mxu0 }
  0xf0   :  { %v139_v23 = vpack.c.bf16 %v138_v21, %v138_v21 }
  0xf1   :  { %v433_v24 = vpop.f32.mrf.mxu0 }
  0xf2   :  { %451 = vmatmul.mubr.bf16.vlgmr.msra.gmra.mxu1 %v139_v23 }
 0x1b2   :  { %v245_v32 = vpop.f32.mrf.mxu1 }
 0x1b3   :  { %v246_v33 = vadd.f32 %v381_v31, %v245_v32 }
 0x1b4   :  { %v452_v34 = vpop.f32.mrf.mxu1 }
 0x1b5   :  { %v251_v35 = vmul.f32 0.5, %v246_v33 }
 0x1b6   :  { %v248_v36 = vpop.f32.mrf.mxu1 }
 0x1b7   :  { %500 = vtanh.f32 %v251_v35 }
 0x1b8   :  { %v453_v37 = vpop.f32.mrf.mxu1 }
 0x1c4   :  { %v501_v38 = vpop.eup %500 }
 0x1c5   :  { %v253_v39 = vmul.f32 0.5, %v501_v38 }
 0x1c7   :  { %v254_v40 = vadd.f32 0.5, %v253_v39 }
 0x1c9   :  { %v255_v41 = vpack.c.bf16 %v254_v40, %v254_v40 }
 0x1cb   :  { %471 = vmatmul.mubr.bf16.vlgmr.msra.gmra.mxu0 %v255_v41 }
 0x28b   :  { %v361_v43 = vpop.f32.mrf.mxu0 }
 0x28c   :  { %v362_v44 = vadd.f32 %v390_v42, %v361_v43 }
 0x28d   :  { %v472_v45 = vpop.f32.mrf.mxu0 }
 0x28e   :  { %368 = vst.msk [vmem:[%s691_s7] sm:$0xff] %vm367_vm2, %v362_v44 }
 0x28f   :  { %v364_v46 = vpop.f32.mrf.mxu0 }
 0x291   :  { %v473_v47 = vpop.f32.mrf.mxu0 }
 0x292   :  { %373 = vsyncpa [#allocation3], 1 }
 0x293   :  { %374 = vsyncpa [#allocation5], 1 }

</bundles_post_ra>
